<compile_context>
chip_gen: v5e
topology: v5e:2x2
jax: 0.10.0
libtpu: 0.0.40
codegen_flags: <defaults>
</compile_context>

<pallas_src>
import math

import jax
import jax.numpy as jnp
from jax.experimental import pallas as pl
from jax.experimental.pallas import tpu as pltpu

_LANE = 128
_TARGET_BLOCK_BYTES = 4 * 1024 * 1024   # ~4 MiB per block (v6e/v7x sweet spot)
_VMEM_LIMIT_BYTES = 32 * 1024 * 1024    # in+out double-buffered 4 MiB blocks = 16 MiB + headroom


def _drop_path_kernel(scale_ref, x_ref, o_ref):
    # scale_ref: (Bb, 1, 1) f32 in VMEM; x_ref / o_ref: (Bb, tile_r, 128).
    # f32 multiply (broadcast over rows/lanes), cast product for the store.
    o_ref[...] = (x_ref[...] * scale_ref[...]).astype(o_ref.dtype)


def _sublane_multiple(dtype) -> int:
    # Packed-sublane multiple: 8 for 4-byte, 16 for 2-byte, 32 for 1-byte dtypes.
    return max(8, 32 // jnp.dtype(dtype).itemsize)


def _pick_row_tile(rows: int, sub_mult: int, max_rows: int) -> int:
    """Rows per block. Full sample if it fits, else a sublane-aligned tile,
    preferring a divisor of `rows` (no masked partial last tile)."""
    if rows <= max_rows:
        return rows  # full-extent dim -> (8,128) constraint satisfied automatically
    cap = max(sub_mult, (max_rows // sub_mult) * sub_mult)
    t = cap
    while t >= max(sub_mult, cap // 2):
        if rows % t == 0:
            return t
        t -= sub_mult
    return cap  # ragged last tile; handled (correctly) by Pallas edge clipping


def _pick_batch_block(B: int, max_samples: int) -> int:
    """Largest divisor of B not exceeding max_samples (avoids ragged batch blocks)."""
    for d in range(min(B, max(1, max_samples)), 0, -1):
        if B % d == 0:
            return d
    return 1


def drop_path(x, *, drop_prob, key=None, seed=0, training=True, donate_x=False):
    """Pallas DropPath. x: (B, ...); per-sample mask broadcasts over trailing dims."""
    if drop_prob is None or drop_prob == 0.0 or not training:
        return x  # identity fast path, same as the PyTorch module
    keep_prob = 1.0 - float(drop_prob)
    if key is None:
        key = jax.random.PRNGKey(seed)

    B = x.shape[0]
    L = math.prod(x.shape[1:]) if x.ndim > 1 else 1

    # Per-sample keep decision (0/1), drawn once with jax.random (not in-kernel).
    u = jax.random.uniform(key, (B,), dtype=jnp.float32)
    mask = jnp.floor(jnp.float32(keep_prob) + u)                      # (B,) 0/1
    scale = (mask / jnp.float32(keep_prob)).reshape(B, 1, 1)          # 0 or 1/keep_prob, f32

    # Lane-dense layout: pad the flattened sample up to a multiple of 128 lanes.
    Lp = ((L + _LANE - 1) // _LANE) * _LANE
    x2 = x.reshape(B, L)
    if Lp != L:
        x2 = jnp.pad(x2, ((0, 0), (0, Lp - L)))
    rows = Lp // _LANE
    x3 = x2.reshape(B, rows, _LANE)

    itemsize = jnp.dtype(x.dtype).itemsize
    sub_mult = _sublane_multiple(x.dtype)
    max_rows_per_block = max(1, _TARGET_BLOCK_BYTES // (_LANE * itemsize))

    tile_r = _pick_row_tile(rows, sub_mult, max_rows_per_block)
    if tile_r == rows:
        # Whole sample fits a block -> pack several samples per grid step.
        Bb = _pick_batch_block(B, max_rows_per_block // max(rows, 1))
    else:
        Bb = 1
    n_b = B // Bb
    n_t = pl.cdiv(rows, tile_r)

    block = (Bb, tile_r, _LANE)
    io_alias = {1: 0} if donate_x else {}  # operand 1 is x3 (0 is scale)

    out = pl.pallas_call(
        _drop_path_kernel,
        out_shape=jax.ShapeDtypeStruct((B, rows, _LANE), x.dtype),
        grid_spec=pltpu.PrefetchScalarGridSpec(
            num_scalar_prefetch=0,
            grid=(n_b, n_t),
            in_specs=[
                pl.BlockSpec((Bb, 1, 1), lambda bi, ti: (bi, 0, 0)),   # scale
                pl.BlockSpec(block, lambda bi, ti: (bi, ti, 0)),        # x
            ],
            out_specs=pl.BlockSpec(block, lambda bi, ti: (bi, ti, 0)),
        ),
        compiler_params=pltpu.CompilerParams(
            dimension_semantics=("parallel", "parallel"),
            vmem_limit_bytes=_VMEM_LIMIT_BYTES),
        input_output_aliases=io_alias,
    )(scale, x3)

    if Lp != L:
        out = out.reshape(B, Lp)[:, :L]
    return out.reshape(x.shape)


if __name__ == "__main__":
    # Swin-T style (B, tokens, channels), small deterministic example.
    B, N, D = 2, 8, 32
    x = jax.random.normal(jax.random.PRNGKey(0), (B, N, D), dtype=jnp.float32)

    drop_prob = 0.3
    keep_prob = 1.0 - drop_prob
    key = jax.random.PRNGKey(1)

    out = jax.block_until_ready(
        drop_path(x, drop_prob=drop_prob, key=key, training=True))

    # Reference: identical mask math to the PyTorch module, same RNG draw.
    u = jax.random.uniform(key, (B,), dtype=jnp.float32)
    ref_mask = jnp.floor(jnp.float32(keep_prob) + u)
    ref = x / keep_prob * ref_mask[:, None, None]
    assert jnp.allclose(out, ref, rtol=1e-6, atol=1e-6), "mismatch vs reference"

    # Each sample is either all-zero or exactly x / keep_prob.
    for b in range(B):
        is_zero = bool(jnp.all(out[b] == 0.0))
        is_scaled = bool(jnp.allclose(out[b], x[b] / keep_prob, rtol=1e-6, atol=1e-6))
        assert is_zero or is_scaled, f"sample {b}: invalid DropPath output"

    # Unaligned trailing size -> exercises the pad-to-128-lanes path.
    x_u = jax.random.normal(jax.random.PRNGKey(2), (B, 7, 9), dtype=jnp.float32)
    out_u = jax.block_until_ready(
        drop_path(x_u, drop_prob=drop_prob, key=key, training=True))
    ref_u = x_u / keep_prob * ref_mask[:, None, None]
    assert jnp.allclose(out_u, ref_u, rtol=1e-6, atol=1e-6), "unaligned-L mismatch"

    # bf16 path (16-row sublane packing multiple, f32 multiply + cast).
    x_bf = x.astype(jnp.bfloat16)
    out_bf = jax.block_until_ready(
        drop_path(x_bf, drop_prob=drop_prob, key=key, training=True))
    ref_bf = (x_bf.astype(jnp.float32) / keep_prob * ref_mask[:, None, None]
              ).astype(jnp.bfloat16).astype(jnp.float32)
    assert jnp.allclose(out_bf.astype(jnp.float32), ref_bf, rtol=1e-2, atol=1e-2)

    # Eval-mode / drop_prob == 0 identity paths.
    out_eval = jax.block_until_ready(
        drop_path(x, drop_prob=drop_prob, training=False))
    assert bool(jnp.all(out_eval == x))
    assert bool(jnp.all(drop_path(x, drop_prob=0.0, training=True) == x))

    print("KERNEL_OK")
</pallas_src>

<mosaic_0001>
module attributes {stable_mosaic.version = 11 : i64} {
  func.func @_drop_path_kernel(%arg0: i32, %arg1: i32, %arg2: memref<2x1x1xf32, #tpu.memory_space<vmem>>, %arg3: memref<2x2x128xf32, #tpu.memory_space<vmem>>, %arg4: memref<2x2x128xf32, #tpu.memory_space<vmem>>) attributes {dimension_semantics = [#tpu.dimension_semantics<parallel>, #tpu.dimension_semantics<parallel>], iteration_bounds = array<i64: 1, 1>, scalar_prefetch = 0 : i64, scratch_operands = 0 : i64, tpu.core_type = #tpu.core_type<tc>, window_params = [{transform_indices = @transform_0, window_bounds = array<i64: 2, 1, 1>}, {transform_indices = @transform_1, window_bounds = array<i64: 2, 2, 128>}, {transform_indices = @transform_2, window_bounds = array<i64: 2, 2, 128>}]} {
    %c0 = arith.constant 0 : index
    %c0_0 = arith.constant 0 : index
    %c0_1 = arith.constant 0 : index
    %0 = vector.load %arg3[%c0, %c0_0, %c0_1] : memref<2x2x128xf32, #tpu.memory_space<vmem>>, vector<2x2x128xf32>
    %c0_2 = arith.constant 0 : index
    %c0_3 = arith.constant 0 : index
    %c0_4 = arith.constant 0 : index
    %1 = vector.load %arg2[%c0_2, %c0_3, %c0_4] : memref<2x1x1xf32, #tpu.memory_space<vmem>>, vector<2x1x1xf32>
    %2 = vector.broadcast %1 : vector<2x1x1xf32> to vector<2x2x128xf32>
    %3 = arith.mulf %0, %2 : vector<2x2x128xf32>
    %c0_5 = arith.constant 0 : index
    %c0_6 = arith.constant 0 : index
    %c0_7 = arith.constant 0 : index
    %4 = vector.load %arg4[%c0_5, %c0_6, %c0_7] : memref<2x2x128xf32, #tpu.memory_space<vmem>>, vector<2x2x128xf32>
    tpu.vector_store %arg4[%c0_5, %c0_6, %c0_7], %3 {strides = array<i32>} : memref<2x2x128xf32, #tpu.memory_space<vmem>>, vector<2x2x128xf32>,
    return
  }
  func.func @transform_0(%arg0: i32, %arg1: i32) -> (i32, i32, i32) {
    %c0_i32 = arith.constant 0 : i32
    %c0_i32_0 = arith.constant 0 : i32
    %c0_i32_1 = arith.constant 0 : i32
    return %arg0, %c0_i32, %c0_i32_0 : i32, i32, i32
  }
  func.func @transform_1(%arg0: i32, %arg1: i32) -> (i32, i32, i32) {
    %c0_i32 = arith.constant 0 : i32
    %c0_i32_0 = arith.constant 0 : i32
    return %arg0, %arg1, %c0_i32 : i32, i32, i32
  }
  func.func @transform_2(%arg0: i32, %arg1: i32) -> (i32, i32, i32) {
    %c0_i32 = arith.constant 0 : i32
    %c0_i32_0 = arith.constant 0 : i32
    return %arg0, %arg1, %c0_i32 : i32, i32, i32
  }
}

</mosaic_0001>

<bundles_post_ra>
// kernel: tpu_custom_call.1
= control target key start
LH: loop header
LB: loop body
LE: loop exit
PB: predicated region body
PF: predicated region fallthrough
CT: control target
= control target key end

     0   :  { %7 = vsyncpa [#allocation3], 0  ;;  %s159_s0 = inlined_call_operand.vmem [shape: f32[2,1,1], index: 0, kind: input, shape index: {}]   ;;  %s160_s1 = inlined_call_operand.hbm [shape: f32[2,2,128], index: 1, kind: input, shape index: {}]   ;;  %s161_s2 = inlined_call_operand.hbm [shape: f32[2,2,128], index: 2, kind: output, shape index: {}]  }
   0x1   :  { %8 = vsyncpa [#allocation4], 0  ;;  %s15_s11 = sshll.u32 %s160_s1, 4  ;;  %s127_s12 = smov [#allocation2]   ;;  %s16_s11 = int_to_ptr.hbm [resolvable:$true] %s15_s11 }
   0x2   :  { %s17_s13 = sshll.u32 %s127_s12, 4  ;;  %s128_s14 = smov 32   ;;  %s18_s13 = int_to_ptr.vmem [resolvable:$true] %s17_s13 }
   0x3   :  { %s129_s15 = smov 2  }
   0x4   :  { %23 = dma.hbm_to_vmem [thread:$0]  %s16_s11, 64, %s18_s13, [#allocation3], %s128_s14, %s128_s14, %s129_s15  }
   0x5   :  { %123 = dma.done.wait [#allocation3], 64  }
   0x6   :  { %124 = vsyncadd [#allocation3], 4294967232  ;;  %v130_v0 = vmov 0   ;;  %v73_v1 = vld [vmem:[%s159_s0] ss:$0 sm:$0xff]  ;;  %s131_s1 = smov [#allocation5]  }
   0x7   :  { %72 = vset.pattern.permute.xlu0 %v130_v0  ;;  %v74_v2 = vld [vmem:[%s159_s0 + $0x1] ss:$0 sm:$0xff]  ;;  %v29_v6 = vld [vmem:[#allocation2 + $0x2] sm:$0x3]  ;;  %s52_s20 = sshll.u32 %s131_s1, 4  ;;  %s54_s23 = sshll.u32 %s161_s2, 4  ;;  %s53_s20 = int_to_ptr.vmem [resolvable:$true] %s52_s20  ;;  %s55_s23 = int_to_ptr.hbm [resolvable:$true] %s54_s23 }
   0x8   :  { %37 = vperm.xlu0 %72, %v73_v1   ;;  %v28_v3 = vld [vmem:[#allocation2] sm:$0x3] }
  0x10   :  { %41 = vperm.xlu0 %72, %v74_v2  }
  0x7a   :  { %v38_v4 = vpop.permute.xlu0 %37 }
  0x7b   :  { %v44_v5 = vmul.f32 %v38_v4, %v28_v3 }
  0x7d   :  { %46 = vst [vmem:[#allocation5] sm:$0x3] %v44_v5 }
  0x82   :  { %v42_v7 = vpop.permute.xlu0 %41 }
  0x83   :  { %v45_v8 = vmul.f32 %v42_v7, %v29_v6 }
  0x85   :  { %47 = vst [vmem:[#allocation5 + $0x2] sm:$0x3] %v45_v8 }
  0x86   :  { %60 = dma.vmem_to_hbm [thread:$0]  %s53_s20, 64, %s55_s23, [#allocation4], %s128_s14, %s128_s14, %s129_s15  }
  0x87   :  { %125 = dma.done.wait [#allocation4], 64  }
  0x88   :  { %126 = vsyncadd [#allocation4], 4294967232 }
  0x89   :  { %65 = vsyncpa [#allocation3], 1 }
  0x8a   :  { %66 = vsyncpa [#allocation4], 1 }

</bundles_post_ra>
